<compile_context>
chip_gen: v7x
topology: tpu7x:2x2x1
jax: 0.10.0
libtpu: 0.0.40
codegen_flags: <defaults>
</compile_context>

<pallas_src>
import functools

import jax
import jax.numpy as jnp
from jax.experimental import pallas as pl
from jax.experimental.pallas import tpu as pltpu

B = 2                      # batch
GALLERY_INPUT_DIM = 28     # gallery_input_dim
GALLERY_EMBED_DIM = 64     # gallery_embedding_dim

# Kernel-facing padded dims (lane / sublane alignment).
K_PAD = 32                 # contraction dim 28 -> 32 (sublane multiple)
N_PAD = 128                # output dim 64 -> 128 (lane-dense, unmasked stores)


def _round_up(x, m):
    return ((x + m - 1) // m) * m


# --------------------------------------------------------------------------
# Kernel: one lane-dense MXU dot + bias add per batch tile.
#   x_ref: (Bt, K_PAD), wT_ref: (K_PAD, N_PAD), b_ref: (1, N_PAD)
# --------------------------------------------------------------------------
def _gallery_encoder_kernel(x_ref, wT_ref, b_ref, o_ref):
    y = jnp.dot(x_ref[...], wT_ref[...], preferred_element_type=jnp.float32)
    o_ref[...] = (y + b_ref[...]).astype(o_ref.dtype)


@functools.partial(jax.jit, static_argnames=("out_dim",))
def gallery_encoder_forward(image, wT_pad, b_pad, out_dim=GALLERY_EMBED_DIM):
    """image: (B, in_dim) f32; wT_pad: (K_PAD, N_PAD); b_pad: (1, N_PAD).

    Returns (B, out_dim) f32, identical to torch's image @ W.T + b.
    """
    b_rows, in_dim = image.shape

    # Pad batch rows to a multiple of the batch tile, contraction dim to K_PAD.
    bt = min(512, _round_up(b_rows, 8))          # large tile when batched
    b_pad_rows = _round_up(b_rows, bt)
    x = jnp.zeros((b_pad_rows, K_PAD), dtype=image.dtype)
    x = x.at[:b_rows, :in_dim].set(image)

    grid = (b_pad_rows // bt,)

    cost = pl.CostEstimate(
        flops=2 * b_rows * in_dim * out_dim,
        transcendentals=0,
        bytes_accessed=(x.size + wT_pad.size + b_pad.size
                        + b_pad_rows * N_PAD) * 4,
    )

    out_padded = pl.pallas_call(
        _gallery_encoder_kernel,
        out_shape=jax.ShapeDtypeStruct((b_pad_rows, N_PAD), jnp.float32),
        grid=grid,
        in_specs=[
            pl.BlockSpec((bt, K_PAD), lambda i: (i, 0)),       # x streams
            pl.BlockSpec((K_PAD, N_PAD), lambda i: (0, 0)),    # weight resident
            pl.BlockSpec((1, N_PAD), lambda i: (0, 0)),        # bias resident
        ],
        out_specs=pl.BlockSpec((bt, N_PAD), lambda i: (i, 0)),
        compiler_params=pltpu.CompilerParams(
            dimension_semantics=("parallel",)),
        cost_estimate=cost,
    )(x, wT_pad, b_pad)

    return out_padded[:b_rows, :out_dim]


# --------------------------------------------------------------------------
# Deterministic parameter init (mimics nn.Linear: weight (out, in), bias (out,)),
# stored pre-transposed and zero-padded to the kernel-facing shapes.
# --------------------------------------------------------------------------
def init_params(key):
    kw, kb = jax.random.split(key, 2)
    bound = 1.0 / float(GALLERY_INPUT_DIM) ** 0.5
    w = jax.random.uniform(kw, (GALLERY_EMBED_DIM, GALLERY_INPUT_DIM),
                           minval=-bound, maxval=bound, dtype=jnp.float32)
    b = jax.random.uniform(kb, (GALLERY_EMBED_DIM,),
                           minval=-bound, maxval=bound, dtype=jnp.float32)

    wT_pad = jnp.zeros((K_PAD, N_PAD), dtype=jnp.float32)
    wT_pad = wT_pad.at[:GALLERY_INPUT_DIM, :GALLERY_EMBED_DIM].set(w.T)
    b_pad = jnp.zeros((1, N_PAD), dtype=jnp.float32)
    b_pad = b_pad.at[:, :GALLERY_EMBED_DIM].set(b)

    return {"w": w, "b": b, "wT_pad": wT_pad, "b_pad": b_pad}


# --------------------------------------------------------------------------
# Pure-JAX reference (unpadded) for the correctness check.
# --------------------------------------------------------------------------
def reference_forward(params, image):
    return image @ params["w"].T + params["b"][None, :]


if __name__ == "__main__":
    key = jax.random.PRNGKey(0)
    kp, kx = jax.random.split(key, 2)
    params = init_params(kp)
    image = jax.random.normal(kx, (B, GALLERY_INPUT_DIM), dtype=jnp.float32)

    y = gallery_encoder_forward(image, params["wT_pad"], params["b_pad"],
                                out_dim=GALLERY_EMBED_DIM)
    y = jax.block_until_ready(y)

    y_ref = reference_forward(params, image)
    assert y.shape == (B, GALLERY_EMBED_DIM), y.shape
    if not bool(jnp.allclose(y, y_ref, rtol=1e-5, atol=1e-5)):
        raise AssertionError(f"Pallas/reference mismatch:\n{y}\n{y_ref}")
    print("KERNEL_OK")
</pallas_src>

<mosaic_0001>
module attributes {stable_mosaic.version = 11 : i64} {
  func.func @_gallery_encoder_kernel(%arg0: i32, %arg1: memref<8x32xf32, #tpu.memory_space<vmem>>, %arg2: memref<32x128xf32, #tpu.memory_space<vmem>>, %arg3: memref<1x128xf32, #tpu.memory_space<vmem>>, %arg4: memref<8x128xf32, #tpu.memory_space<vmem>>) attributes {dimension_semantics = [#tpu.dimension_semantics<parallel>], iteration_bounds = array<i64: 1>, scalar_prefetch = 0 : i64, scratch_operands = 0 : i64, tpu.core_type = #tpu.core_type<tc>, window_params = [{transform_indices = @transform_0, window_bounds = array<i64: 8, 32>}, {pipeline_mode = #tpu.pipeline_mode<synchronous>, transform_indices = @transform_1, window_bounds = array<i64: 32, 128>}, {pipeline_mode = #tpu.pipeline_mode<synchronous>, transform_indices = @transform_2, window_bounds = array<i64: 1, 128>}, {transform_indices = @transform_3, window_bounds = array<i64: 8, 128>}]} {
    %c0 = arith.constant 0 : index
    %c0_0 = arith.constant 0 : index
    %0 = vector.load %arg1[%c0, %c0_0] : memref<8x32xf32, #tpu.memory_space<vmem>>, vector<8x32xf32>
    %c0_1 = arith.constant 0 : index
    %c0_2 = arith.constant 0 : index
    %1 = vector.load %arg2[%c0_1, %c0_2] : memref<32x128xf32, #tpu.memory_space<vmem>>, vector<32x128xf32>
    %cst = arith.constant dense<0.000000e+00> : vector<8x128xf32>
    %2 = tpu.matmul %0, %1, %cst {dimension_numbers = #tpu.dot_dimension_numbers<[1], [0], [0], [1], [0, 0, 1, 1], [], []>} : vector<8x32xf32>, vector<32x128xf32>, vector<8x128xf32> -> vector<8x128xf32>
    %c0_3 = arith.constant 0 : index
    %c0_4 = arith.constant 0 : index
    %3 = vector.load %arg3[%c0_3, %c0_4] : memref<1x128xf32, #tpu.memory_space<vmem>>, vector<1x128xf32>
    %4 = vector.broadcast %3 : vector<1x128xf32> to vector<8x128xf32>
    %5 = arith.addf %2, %4 : vector<8x128xf32>
    %c0_5 = arith.constant 0 : index
    %c0_6 = arith.constant 0 : index
    %6 = vector.load %arg4[%c0_5, %c0_6] : memref<8x128xf32, #tpu.memory_space<vmem>>, vector<8x128xf32>
    tpu.vector_store %arg4[%c0_5, %c0_6], %5 {strides = array<i32>} : memref<8x128xf32, #tpu.memory_space<vmem>>, vector<8x128xf32>,
    return
  }
  func.func @transform_0(%arg0: i32) -> (i32, i32) {
    %c0_i32 = arith.constant 0 : i32
    %c0_i32_0 = arith.constant 0 : i32
    return %arg0, %c0_i32 : i32, i32
  }
  func.func @transform_1(%arg0: i32) -> (i32, i32) {
    %c0_i32 = arith.constant 0 : i32
    %c0_i32_0 = arith.constant 0 : i32
    %c0_i32_1 = arith.constant 0 : i32
    return %c0_i32, %c0_i32_0 : i32, i32
  }
  func.func @transform_2(%arg0: i32) -> (i32, i32) {
    %c0_i32 = arith.constant 0 : i32
    %c0_i32_0 = arith.constant 0 : i32
    %c0_i32_1 = arith.constant 0 : i32
    return %c0_i32, %c0_i32_0 : i32, i32
  }
  func.func @transform_3(%arg0: i32) -> (i32, i32) {
    %c0_i32 = arith.constant 0 : i32
    %c0_i32_0 = arith.constant 0 : i32
    return %arg0, %c0_i32 : i32, i32
  }
}

</mosaic_0001>

<bundles_post_ra>
// kernel: gallery_encoder_forward.1
= control target key start
LH: loop header
LB: loop body
LE: loop exit
PB: predicated region body
PF: predicated region fallthrough
CT: control target
= control target key end

     0   :  { %8 = vsyncpa [#allocation3], 0  ;;  %s174_s12 = smov [#allocation2]   ;;  %s221_s0 = inlined_call_operand.vmem [shape: f32[8,32], index: 0, kind: input, shape index: {}]   ;;  %s222_s1 = inlined_call_operand.hbm [shape: f32[32,128], index: 1, kind: input, shape index: {}]   ;;  %s223_s2 = inlined_call_operand.vmem [shape: f32[1,128], index: 2, kind: input, shape index: {}]   ;;  %s224_s3 = inlined_call_operand.vmem [shape: f32[8,128], index: 3, kind: output, shape index: {}]  }
   0x1   :  { %s16_s13 = sshll.u32 %s174_s12, 4  ;;  %s150_s16 = scalar_lea.hbm %s222_s1, 512  ;;  %s17_s13 = int_to_ptr.vmem [resolvable:$true] %s16_s13 }
   0x2   :  { %p151_p0 = scmp.ne.s32.totalorder %s222_s1, %s150_s16  ;;  %p154_p1 = scmp.lt.u32.totalorder %s150_s16, %s222_s1 }
   0x4   :  { %p156_p2 = pnand %p154_p1, %p151_p0 }
   0x6   :  { %159 = shalt.err (!%p156_p2)
}
   0x7   :  { %s160_s21 = scalar_lea.vmem %s17_s13, 512  ;;  %p165_p4 = scmp.lt.s32.totalorder %s17_s13, %s17_s13 }
   0x8   :  { %p161_p3 = scmp.ne.s32.totalorder %s17_s13, %s160_s21  ;;  %p166_p5 = scmp.lt.s32.totalorder %s160_s21, %s160_s21 }
   0xa   :  { %p167_p6 = por %p166_p5, %p165_p4 }
   0xc   :  { %p168_p7 = pnand %p167_p6, %p161_p3 }
   0xe   :  { %171 = shalt.err (!%p168_p7)
}
   0xf   :  { %s175_s22 = smov 128   ;;  %s176_s23 = smov 8  }
  0x10   :  { %22 = dma.hbm_to_vmem [thread:$0]  %s222_s1, 512, %s17_s13, [#allocation3], %s175_s22, %s175_s22, %s176_s23  }
  0x11   :  { %172 = dma.done.wait [#allocation3], 512  }
  0x12   :  { %173 = vsyncadd [#allocation3], 4294966784  ;;  %v177_v0 = vmov 0.0|0.0   ;;  %vm178_vm0 = vmmov 0   ;;  %v179_v1 = vmov 0.0   ;;  %v29_v2 = vld [vmem:[#allocation2] sm:$0xff] }
  0x13   :  { %138 = vmatprep.subr.bf16.mxu0 %v177_v0  ;;  %135 = vmatprep.mubr.msk.f32.mxu0 %vm178_vm0, %v179_v1  ;;  %v30_v3 = vld [vmem:[#allocation2 + $0x8] sm:$0xff]  ;;  %v31_v4 = vld [vmem:[#allocation2 + $0x10] sm:$0xff]  ;;  %v32_v6 = vld [vmem:[#allocation2 + $0x18] sm:$0xff]  ;;  %vm40_vm1 = vcmask 261120  }
  0x14   :  { %v139_v5 = vpack.c.bf16 %v30_v3, %v29_v2  ;;  %v142_v7 = vpack.c.bf16 %v32_v6, %v31_v4  ;;  %v28_v8 = vld [vmem:[%s221_s0] sm:$0xff] }
  0x15   :  { %v120_v9 = vld [vmem:[%s223_s2] ss:$0 sm:$0xff] }
  0x16   :  { %140 = vmatpush3.bf16.msra.mxu0 %v139_v5 }
  0x17   :  { %141 = vmatprep.subr.bf16.mxu0 %v177_v0 }
  0x1a   :  { %143 = vmatpush3.bf16.msra.mxu0 %v142_v7 }
  0x1d   :  { %136 = vmatmul.mubr.msk.f32.vlgmr.msra.gmra.mrb[0].mxu0 %vm40_vm1, %v28_v8 }
  0xf0   :  { %v110_v10 = vpop.f32.mrb[0].mxu0 }
  0xf1   :  { %v111_v11 = vadd.f32 %v120_v9, %v110_v10  ;;  %v137_v12 = vpop.f32.mrb[1].mxu0 }
  0xf3   :  { %114 = vst [vmem:[%s224_s3] sm:$0xff] %v111_v11 }
  0xf4   :  { %119 = vsyncpa [#allocation3], 1 }

</bundles_post_ra>
